<compile_context>
chip_gen: v6e
topology: v6e:2x2x1
jax: 0.10.0
libtpu: 0.0.40
codegen_flags: <defaults>
</compile_context>

<pallas_src>
import jax
import jax.numpy as jnp
from jax.experimental import pallas as pl
from jax.experimental.pallas import tpu as pltpu


def _round_up(a, b):
    return ((a + b - 1) // b) * b


def _make_conv1x1_kernel(c, tn):
    """Kernel body for static channel count `c` and per-block sample count `tn`."""

    def kernel(x_ref, p_ref, o_ref):
        # x_ref: (tn*c, tl) VMEM -- row r is sample (r // c), channel (r % c)
        # p_ref: (c+1,)     SMEM -- [w_0, ..., w_{c-1}, bias]
        # o_ref: (tn, tl)   VMEM output block
        y = x_ref[pl.ds(0, tn, stride=c), :] * p_ref[0]
        for ch in range(1, c):                       # c is tiny; static unroll
            y = y + x_ref[pl.ds(ch, tn, stride=c), :] * p_ref[ch]
        o_ref[...] = (y + p_ref[c]).astype(o_ref.dtype)

    return kernel


def _choose_tiles(n, c, l):
    """Pick (tn, tl) so live VMEM (2x in + 2x out buffers) stays <= ~32 MiB."""
    budget = 32 * 1024 * 1024
    # live bytes = 2 * (tn*c*tl + tn*tl) * 4 = 8 * tn * tl * (c + 1)
    max_elems = budget // (8 * (c + 1))              # cap on tn * tl (f32 elems)

    # Prefer full-L tiles (contiguous per-sample DMA) if >= 8 samples still fit;
    # otherwise lane-dense 4096-wide chunks.
    if l <= max(128, max_elems // 8):
        tl = l
    else:
        tl = 4096

    tn = max(8, min(1024, (max_elems // tl) // 8 * 8))   # sublane-dense rows
    if tn >= n:
        # Whole batch fits in one row-tile.  Full extent is exempt from the
        # 8-sublane rule; split in two when N permits so both of v7x's
        # TensorCores get a block (never slower elsewhere).
        if tl >= l and n >= 16:
            tn = _round_up((n + 1) // 2, 8)
            if tn >= n:
                tn = n
        else:
            tn = n
    return tn, tl


def conv_transform2(x, weight, bias):
    """x: (N, C, L) f32; weight: (1, C, 1) f32; bias: (1,) f32 -> (N, L) f32."""
    n, c, l = x.shape
    tn, tl = _choose_tiles(n, c, l)

    # Free row-major view: row index = sample * C + channel (no data movement).
    x2d = x.reshape(n * c, l)

    # Conv weights + bias packed as (C+1,) scalars for SMEM.
    params = jnp.concatenate(
        [weight.reshape(-1).astype(jnp.float32), bias.reshape(-1).astype(jnp.float32)]
    )

    # Real live footprint (double-buffered dense input + output blocks) + margin.
    live_bytes = 2 * (tn * c * tl * 4) + 2 * (tn * tl * 4)
    vmem_limit = min(max(int(live_bytes * 3 // 2), 32 * 1024 * 1024), 48 * 1024 * 1024)

    out = pl.pallas_call(
        _make_conv1x1_kernel(c, tn),
        out_shape=jax.ShapeDtypeStruct((n, l), jnp.float32),
        grid_spec=pltpu.PrefetchScalarGridSpec(
            num_scalar_prefetch=0,
            grid=(pl.cdiv(n, tn), pl.cdiv(l, tl)),
            in_specs=[
                # Dense (TN*C, TL) slab: rows i*tn*c .. (i+1)*tn*c of the 2D view.
                pl.BlockSpec((tn * c, tl), lambda i, j: (i, j)),
                # 4 floats of parameters -> SMEM scalars, no pipelining.
                pl.BlockSpec(memory_space=pltpu.MemorySpace.SMEM),
            ],
            out_specs=pl.BlockSpec((tn, tl), lambda i, j: (i, j)),
        ),
        compiler_params=pltpu.CompilerParams(
            dimension_semantics=("parallel", "parallel"),
            vmem_limit_bytes=vmem_limit,
        ),
    )(x2d, params)

    return out


def conv_transform2_ref(x, weight, bias):
    """Pure-JAX reference of the PyTorch forward (Conv1d k=1 + flatten)."""
    return jnp.einsum("ncl,c->nl", x, weight[0, :, 0]) + bias[0]


if __name__ == "__main__":
    key = jax.random.PRNGKey(0)
    kx, kw, kb, kx2 = jax.random.split(key, 4)

    N, C, L = 2, 3, 128  # input_channels=3 per module __init__
    x = jax.random.normal(kx, (N, C, L), dtype=jnp.float32)

    # Deterministic parameter init (PyTorch Conv1d default: U(-bound, bound),
    # bound = 1/sqrt(C_in * k)) -- synthetic, not a checkpoint load.
    bound = 1.0 / jnp.sqrt(jnp.float32(C * 1))
    weight = jax.random.uniform(kw, (1, C, 1), jnp.float32, -bound, bound)
    bias = jax.random.uniform(kb, (1,), jnp.float32, -bound, bound)

    out = conv_transform2(x, weight, bias)
    out = jax.block_until_ready(out)
    ref = conv_transform2_ref(x, weight, bias)
    assert out.shape == (N, L), out.shape
    assert jnp.allclose(out, ref, atol=1e-5, rtol=1e-5), "mismatch vs reference"

    # Second small shape exercising multi-block grid + partial edge blocks
    # (N not divisible by TN) to validate the masked writeback path.
    N2, L2 = 20, 384
    x2 = jax.random.normal(kx2, (N2, C, L2), dtype=jnp.float32)
    out2 = jax.block_until_ready(conv_transform2(x2, weight, bias))
    ref2 = conv_transform2_ref(x2, weight, bias)
    assert out2.shape == (N2, L2), out2.shape
    assert jnp.allclose(out2, ref2, atol=1e-5, rtol=1e-5), "mismatch vs reference (tiled)"

    print("KERNEL_OK")
</pallas_src>

<mosaic_0001>
module attributes {stable_mosaic.version = 11 : i64} {
  func.func @kernel(%arg0: i32, %arg1: i32, %arg2: memref<6x128xf32, #tpu.memory_space<vmem>>, %arg3: memref<4xf32, #tpu.memory_space<smem>>, %arg4: memref<2x128xf32, #tpu.memory_space<vmem>>) attributes {dimension_semantics = [#tpu.dimension_semantics<parallel>, #tpu.dimension_semantics<parallel>], iteration_bounds = array<i64: 1, 1>, scalar_prefetch = 0 : i64, scratch_operands = 0 : i64, tpu.core_type = #tpu.core_type<tc>, window_params = [{transform_indices = @transform_0, window_bounds = array<i64: 6, 128>}, {transform_indices = @transform_1, window_bounds = array<i64: 4>}, {transform_indices = @transform_2, window_bounds = array<i64: 2, 128>}]} {
    %c0 = arith.constant 0 : index
    %c0_0 = arith.constant 0 : index
    %0 = tpu.strided_load %arg2[%c0, %c0_0] {strides = array<i32: 3, 1>} : memref<6x128xf32, #tpu.memory_space<vmem>>, vector<2x128xf32>
    %c0_1 = arith.constant 0 : index
    %1 = memref.load %arg3[%c0_1] : memref<4xf32, #tpu.memory_space<smem>>
    %2 = vector.broadcast %1 : f32 to vector<2x128xf32>
    %3 = arith.mulf %0, %2 : vector<2x128xf32>
    %c1 = arith.constant 1 : index
    %c0_2 = arith.constant 0 : index
    %4 = tpu.strided_load %arg2[%c1, %c0_2] {strides = array<i32: 3, 1>} : memref<6x128xf32, #tpu.memory_space<vmem>>, vector<2x128xf32>
    %c1_3 = arith.constant 1 : index
    %5 = memref.load %arg3[%c1_3] : memref<4xf32, #tpu.memory_space<smem>>
    %6 = vector.broadcast %5 : f32 to vector<2x128xf32>
    %7 = arith.mulf %4, %6 : vector<2x128xf32>
    %8 = arith.addf %3, %7 : vector<2x128xf32>
    %c2 = arith.constant 2 : index
    %c0_4 = arith.constant 0 : index
    %9 = tpu.strided_load %arg2[%c2, %c0_4] {strides = array<i32: 3, 1>} : memref<6x128xf32, #tpu.memory_space<vmem>>, vector<2x128xf32>
    %c2_5 = arith.constant 2 : index
    %10 = memref.load %arg3[%c2_5] : memref<4xf32, #tpu.memory_space<smem>>
    %11 = vector.broadcast %10 : f32 to vector<2x128xf32>
    %12 = arith.mulf %9, %11 : vector<2x128xf32>
    %13 = arith.addf %8, %12 : vector<2x128xf32>
    %c3 = arith.constant 3 : index
    %14 = memref.load %arg3[%c3] : memref<4xf32, #tpu.memory_space<smem>>
    %15 = vector.broadcast %14 : f32 to vector<2x128xf32>
    %16 = arith.addf %13, %15 : vector<2x128xf32>
    %c0_6 = arith.constant 0 : index
    %c0_7 = arith.constant 0 : index
    %17 = vector.load %arg4[%c0_6, %c0_7] : memref<2x128xf32, #tpu.memory_space<vmem>>, vector<2x128xf32>
    tpu.vector_store %arg4[%c0_6, %c0_7], %16 {strides = array<i32>} : memref<2x128xf32, #tpu.memory_space<vmem>>, vector<2x128xf32>,
    return
  }
  func.func @transform_0(%arg0: i32, %arg1: i32) -> (i32, i32) {
    %c0_i32 = arith.constant 0 : i32
    return %arg0, %arg1 : i32, i32
  }
  func.func @transform_1(%arg0: i32, %arg1: i32) -> i32 {
    %c0_i32 = arith.constant 0 : i32
    %c0_i32_0 = arith.constant 0 : i32
    return %c0_i32 : i32
  }
  func.func @transform_2(%arg0: i32, %arg1: i32) -> (i32, i32) {
    %c0_i32 = arith.constant 0 : i32
    return %arg0, %arg1 : i32, i32
  }
}

</mosaic_0001>

<bundles_post_ra>
// kernel: tpu_custom_call.1
= control target key start
LH: loop header
LB: loop body
LE: loop exit
PB: predicated region body
PF: predicated region fallthrough
CT: control target
= control target key end

     0   :  { %7 = vsyncpa [#allocation3], 0  ;;  %s164_s0 = inlined_call_operand.hbm [shape: f32[6,128], index: 0, kind: input, shape index: {}]   ;;  %s165_s1 = inlined_call_operand.vmem [shape: f32[4], index: 1, kind: input, shape index: {}]   ;;  %s166_s2 = inlined_call_operand.hbm [shape: f32[2,128], index: 2, kind: output, shape index: {}]  }
   0x1   :  { %8 = vsyncpa [#allocation5], 0 }
   0x2   :  { %9 = vsyncpa [#allocation4], 0  ;;  %s26_s11 = sshll.u32 %s165_s1, 4  ;;  %s137_s12 = smov [#allocation2]   ;;  %s27_s11 = int_to_ptr.vmem [resolvable:$true] %s26_s11 }
   0x3   :  { %s16_s13 = sshll.u32 %s137_s12, 4  ;;  %s17_s13 = int_to_ptr.vmem [resolvable:$true] %s16_s13 }
   0x4   :  { %s87_s14 = scalar_lea.vmem %s17_s13, 128  ;;  %p92_p1 = scmp.lt.s32.totalorder %s17_s13, %s17_s13 }
   0x5   :  { %p88_p0 = scmp.ne.s32.totalorder %s17_s13, %s87_s14  ;;  %p93_p2 = scmp.lt.s32.totalorder %s87_s14, %s87_s14 }
   0x7   :  { %p94_p3 = por %p93_p2, %p92_p1 }
   0x9   :  { %p95_p4 = pnand %p94_p3, %p88_p0 }
   0xb   :  { %98 = shalt.err (!%p95_p4)
}
   0xc   :  { %19 = dma.hbm_to_vmem [thread:$0]  %s164_s0, 128, %s17_s13, [#allocation3]  }
   0xd   :  { %s99_s17 = scalar_lea.vmem %s27_s11, 16  ;;  %p104_p6 = scmp.lt.s32.totalorder %s27_s11, %s27_s11 }
   0xe   :  { %p100_p5 = scmp.ne.s32.totalorder %s27_s11, %s99_s17  ;;  %p105_p7 = scmp.lt.s32.totalorder %s99_s17, %s99_s17 }
  0x10   :  { %p106_p8 = por %p105_p7, %p104_p6 }
  0x12   :  { %p107_p9 = pnand %p106_p8, %p100_p5 }
  0x14   :  { %110 = shalt.err (!%p107_p9)
}
  0x15   :  { %s138_s1 = smov [#allocation6]  }
  0x16   :  { %29 = dma.vmem_to_smem %s27_s11, 16, %s138_s1, [#allocation5]  }
  0x17   :  { %131 = dma.done.wait [#allocation3], 128  }
  0x18   :  { %132 = vsyncadd [#allocation3], 4294967168 }
  0x19   :  { %133 = dma.done.wait [#allocation5], 16  }
  0x1a   :  { %134 = vsyncadd [#allocation5], 4294967280 }
  0x1b   :  { %36 = sfence }
  0x1c   :  { %s38_s18 = sld [smem:[#allocation6]]  ;;  %v37_v0 = vld [vmem:[#allocation2] ss:$3 sm:$0x3]  ;;  %s139_s0 = smov [#allocation7]  }
  0x1d   :  { %s73_s19 = sld [smem:[#allocation6 + $0x1]]  ;;  %v42_v1 = vld [vmem:[#allocation2 + $0x1] ss:$3 sm:$0x3]  ;;  %s63_s22 = sshll.u32 %s139_s0, 4  ;;  %s64_s22 = int_to_ptr.vmem [resolvable:$true] %s63_s22 }
  0x1e   :  { %s74_s20 = sld [smem:[#allocation6 + $0x2]]  ;;  %v48_v3 = vld [vmem:[#allocation2 + $0x2] ss:$3 sm:$0x3]  ;;  %s111_s23 = scalar_lea.vmem %s64_s22, 32 }
  0x1f   :  { %s75_s21 = sld [smem:[#allocation6 + $0x3]]  ;;  %p112_p10 = scmp.ne.s32.totalorder %s64_s22, %s111_s23 }
  0x20   :  { %p116_p11 = scmp.lt.s32.totalorder %s64_s22, %s64_s22  ;;  %p117_p12 = scmp.lt.s32.totalorder %s111_s23, %s111_s23 }
  0x22   :  { %v39_v2 = vstv %s38_s18  ;;  %p118_p13 = por %p117_p12, %p116_p11 }
  0x23   :  { %v40_v4 = vmul.f32 %v39_v2, %v37_v0  ;;  %v44_v5 = vstv %s73_s19 }
  0x24   :  { %v45_v6 = vmul.f32 %v44_v5, %v42_v1  ;;  %v50_v7 = vstv %s74_s20  ;;  %p119_p0 = pnand %p118_p13, %p112_p10 }
  0x25   :  { %v51_v8 = vmul.f32 %v50_v7, %v48_v3  ;;  %v54_v10 = vstv %s75_s21 }
  0x26   :  { %v46_v9 = vadd.f32 %v45_v6, %v40_v4 }
  0x28   :  { %v52_v11 = vadd.f32 %v51_v8, %v46_v9 }
  0x2a   :  { %v55_v12 = vadd.f32 %v54_v10, %v52_v11 }
  0x2c   :  { %56 = vst [vmem:[#allocation7] sm:$0x3] %v55_v12 }
  0x2d   :  { %122 = shalt.err (!%p119_p0)
}
  0x2e   :  { %66 = dma.vmem_to_hbm [thread:$0]  %s64_s22, 32, %s166_s2, [#allocation4]  }
  0x2f   :  { %135 = dma.done.wait [#allocation4], 32  }
  0x30   :  { %136 = vsyncadd [#allocation4], 4294967264 }
  0x31   :  { %70 = vsyncpa [#allocation3], 1 }
  0x32   :  { %71 = vsyncpa [#allocation4], 1 }
  0x33   :  { %72 = vsyncpa [#allocation5], 1 }

</bundles_post_ra>
